<compile_context>
chip_gen: v5e
topology: v5e:2x2
jax: 0.10.0
libtpu: 0.0.40
codegen_flags: <defaults>
</compile_context>

<pallas_src>
import functools
import math

import jax
import jax.numpy as jnp
from jax.experimental import pallas as pl
from jax.experimental.pallas import tpu as pltpu


def _equal_linear_kernel(x_ref, w_ref, b_ref, o_ref, *,
                         w_scale, bias_scale, fused_lrelu, scale_on_acc, mxu_dtype):
    # x_ref: (TM, K) rows of the flattened input
    # w_ref: (N, K)  weight exactly as stored by the module (no wrapper transpose)
    # b_ref: (1, N)  raw bias
    # o_ref: (TM, N) lane-dense output tile (N padded to a multiple of 128)
    x = x_ref[...]
    w = w_ref[...]

    if not scale_on_acc:
        # scale the (smaller) x tile before the matmul
        x = x.astype(jnp.float32) * w_scale

    if mxu_dtype is not None:
        x = x.astype(mxu_dtype)
        w = w.astype(mxu_dtype)

    # x (TM, K) . w (N, K) contracted over K -> (TM, N); single MXU matmul, f32 accumulate.
    acc = jax.lax.dot_general(
        x, w,
        dimension_numbers=(((1,), (1,)), ((), ())),
        preferred_element_type=jnp.float32)

    b = b_ref[...].astype(jnp.float32) * bias_scale          # (1, N), tiny
    if scale_on_acc:
        acc = acc * w_scale + b
    else:
        acc = acc + b

    if fused_lrelu:
        # sqrt(2) is already folded into w_scale / bias_scale; one VPU pass only.
        acc = jnp.maximum(acc, 0.2 * acc)

    o_ref[...] = acc.astype(o_ref.dtype)


def equal_linear(x, weight, bias=None, *, lr_mul=1.0, activation=None,
                 block_m=512, mxu_dtype=None):
    """Pallas EqualLinear forward.

    x: (..., in_dim), weight: (out_dim, in_dim), bias: (out_dim,) or None.
    mxu_dtype: None -> follow input dtype; pass jnp.bfloat16 to force the bf16 MXU path
    (f32 accumulation) on f32 inputs (recommended on v6e/v7x when tolerance allows).
    """
    out_dim, in_dim = weight.shape
    # Module semantics: ANY truthy activation takes the fused_leaky_relu path.
    fused = bool(activation)

    w_scale = (1.0 / math.sqrt(in_dim)) * lr_mul
    bias_scale = float(lr_mul)
    if fused:
        s2 = math.sqrt(2.0)
        w_scale *= s2
        bias_scale *= s2

    out_dtype = x.dtype
    if mxu_dtype is None and (x.dtype == jnp.bfloat16 or weight.dtype == jnp.bfloat16):
        mxu_dtype = jnp.bfloat16

    # ---- flatten leading dims to a single row axis -------------------------------------
    lead_shape = x.shape[:-1]
    m = 1
    for d in lead_shape:
        m *= int(d)
    x2 = x.reshape(m, in_dim)

    # ---- pad out_dim to a lane-dense multiple of 128 ------------------------------------
    n_pad = max(128, ((out_dim + 127) // 128) * 128)
    if bias is None:
        bias = jnp.zeros((out_dim,), weight.dtype)
    if n_pad != out_dim:
        w_arr = jnp.pad(weight, ((0, n_pad - out_dim), (0, 0)))
        b_arr = jnp.pad(bias, (0, n_pad - out_dim))
    else:
        w_arr = weight
        b_arr = bias
    b2 = b_arr.reshape(1, n_pad)

    # ---- row-tile selection: keep tm large, pad M instead of shrinking the tile ---------
    m_pad8 = max(8, ((m + 7) // 8) * 8)
    tm_cap = max(8, (min(block_m, m_pad8) // 8) * 8)
    if m_pad8 <= tm_cap:
        # whole row range fits one tile; if M is big enough, split in two so v7x's
        # two TensorCores both get work (neutral on v5e/v6e, ~2x on v7x for medium M).
        if m_pad8 >= 64 and (m_pad8 // 2) % 8 == 0:
            tm = m_pad8 // 2
        else:
            tm = m_pad8
        m_pad = m_pad8
    else:
        tm = tm_cap
        m_pad = ((m_pad8 + tm - 1) // tm) * tm
    grid = (m_pad // tm,)

    if m_pad != m:
        x2 = jnp.pad(x2, ((0, m_pad - m), (0, 0)))

    # apply the equalized-lr scale on whichever side is smaller
    scale_on_acc = n_pad <= in_dim

    kernel = functools.partial(
        _equal_linear_kernel,
        w_scale=w_scale, bias_scale=bias_scale, fused_lrelu=fused,
        scale_on_acc=scale_on_acc, mxu_dtype=mxu_dtype)

    # ---- VMEM budget: double-buffered x/out tiles + (pipelined) weight + bias -----------
    x_b = jnp.dtype(x2.dtype).itemsize
    w_b = jnp.dtype(w_arr.dtype).itemsize
    o_b = jnp.dtype(out_dtype).itemsize
    need = (2 * tm * in_dim * x_b          # x tile, double buffered
            + 2 * in_dim * n_pad * w_b     # weight block (invariant, but budget 2 buffers)
            + 2 * tm * n_pad * o_b         # output tile, double buffered
            + 2 * n_pad * 4                # bias
            + tm * n_pad * 4               # f32 accumulator temporaries
            + tm * in_dim * 4)             # f32/bf16 cast temporaries
    vmem_limit = int(min(96 * (1 << 20), max(32 * (1 << 20), 2 * need)))

    flops = 2 * m_pad * in_dim * n_pad
    bytes_accessed = (m_pad * in_dim * x_b + in_dim * n_pad * w_b
                      + n_pad * w_b + m_pad * n_pad * o_b)

    out = pl.pallas_call(
        kernel,
        out_shape=jax.ShapeDtypeStruct((m_pad, n_pad), out_dtype),
        grid_spec=pltpu.PrefetchScalarGridSpec(
            num_scalar_prefetch=0,
            grid=grid,
            in_specs=[
                pl.BlockSpec((tm, in_dim), lambda i: (i, 0)),
                pl.BlockSpec((n_pad, in_dim), lambda i: (0, 0)),   # grid-invariant weight
                pl.BlockSpec((1, n_pad), lambda i: (0, 0)),        # grid-invariant bias
            ],
            out_specs=pl.BlockSpec((tm, n_pad), lambda i: (i, 0)),
        ),
        compiler_params=pltpu.CompilerParams(
            dimension_semantics=("parallel",),
            vmem_limit_bytes=vmem_limit),
        cost_estimate=pl.CostEstimate(
            flops=flops, transcendentals=0, bytes_accessed=bytes_accessed),
    )(x2, w_arr, b2)

    out = out[:m, :out_dim]
    return out.reshape(*lead_shape, out_dim)


def _reference(x, weight, bias, *, lr_mul=1.0, activation=None):
    in_dim = weight.shape[1]
    scale = (1.0 / math.sqrt(in_dim)) * lr_mul
    out = jnp.einsum("...k,nk->...n", x.astype(jnp.float32),
                     (weight * scale).astype(jnp.float32)) + bias * lr_mul
    if activation:
        out = jnp.where(out >= 0.0, out, 0.2 * out) * math.sqrt(2.0)
    return out


if __name__ == "__main__":
    # small shapes consistent with the module: (batch, seq, in_dim) -> (batch, seq, out_dim)
    batch, seq = 2, 8
    in_dim, out_dim = 64, 128
    lr_mul = 0.5
    bias_init = 0.2

    key = jax.random.PRNGKey(0)
    k_x, k_w = jax.random.split(key, 2)
    x = jax.random.normal(k_x, (batch, seq, in_dim), jnp.float32)
    # parameter init matching EqualLinear.__init__: weight ~ randn / lr_mul, bias = bias_init
    weight = jax.random.normal(k_w, (out_dim, in_dim), jnp.float32) / lr_mul
    bias = jnp.full((out_dim,), bias_init, jnp.float32)

    # path 1: no activation (plain equalized linear), f32 MXU
    out_lin = jax.block_until_ready(
        equal_linear(x, weight, bias, lr_mul=lr_mul, activation=None))
    ref_lin = _reference(x, weight, bias, lr_mul=lr_mul, activation=None)
    assert out_lin.shape == (batch, seq, out_dim)
    assert jnp.allclose(out_lin, ref_lin, rtol=1e-3, atol=1e-3)

    # path 2: activation='fused_lrelu' (bias add + leaky_relu(0.2) * sqrt(2) fused), f32 MXU
    out_act = jax.block_until_ready(
        equal_linear(x, weight, bias, lr_mul=lr_mul, activation="fused_lrelu"))
    ref_act = _reference(x, weight, bias, lr_mul=lr_mul, activation="fused_lrelu")
    assert out_act.shape == (batch, seq, out_dim)
    assert jnp.allclose(out_act, ref_act, rtol=1e-3, atol=1e-3)

    # path 3: bf16 MXU path (f32 accumulation) — the v6e/v7x fast path; looser tolerance
    out_bf16 = jax.block_until_ready(
        equal_linear(x, weight, bias, lr_mul=lr_mul, activation="fused_lrelu",
                     mxu_dtype=jnp.bfloat16))
    assert out_bf16.shape == (batch, seq, out_dim)
    assert jnp.allclose(out_bf16, ref_act, rtol=6e-2, atol=6e-2)

    print("KERNEL_OK")
</pallas_src>

<mosaic_0001>
module attributes {stable_mosaic.version = 11 : i64} {
  func.func @_equal_linear_kernel(%arg0: i32, %arg1: memref<16x64xf32, #tpu.memory_space<vmem>>, %arg2: memref<128x64xf32, #tpu.memory_space<vmem>>, %arg3: memref<1x128xf32, #tpu.memory_space<vmem>>, %arg4: memref<16x128xf32, #tpu.memory_space<vmem>>) attributes {dimension_semantics = [#tpu.dimension_semantics<parallel>], iteration_bounds = array<i64: 1>, scalar_prefetch = 0 : i64, scratch_operands = 0 : i64, tpu.core_type = #tpu.core_type<tc>, window_params = [{transform_indices = @transform_0, window_bounds = array<i64: 16, 64>}, {pipeline_mode = #tpu.pipeline_mode<synchronous>, transform_indices = @transform_1, window_bounds = array<i64: 128, 64>}, {pipeline_mode = #tpu.pipeline_mode<synchronous>, transform_indices = @transform_2, window_bounds = array<i64: 1, 128>}, {transform_indices = @transform_3, window_bounds = array<i64: 16, 128>}]} {
    %c0 = arith.constant 0 : index
    %c0_0 = arith.constant 0 : index
    %0 = vector.load %arg1[%c0, %c0_0] : memref<16x64xf32, #tpu.memory_space<vmem>>, vector<16x64xf32>
    %c0_1 = arith.constant 0 : index
    %c0_2 = arith.constant 0 : index
    %1 = vector.load %arg2[%c0_1, %c0_2] : memref<128x64xf32, #tpu.memory_space<vmem>>, vector<128x64xf32>
    %cst = arith.constant 6.250000e-02 : f32
    %2 = vector.broadcast %cst : f32 to vector<16x64xf32>
    %3 = arith.mulf %0, %2 : vector<16x64xf32>
    %cst_3 = arith.constant dense<0.000000e+00> : vector<16x128xf32>
    %4 = tpu.matmul %3, %1, %cst_3 {dimension_numbers = #tpu.dot_dimension_numbers<[1], [1], [0], [0], [0, 0, 1, 0], [], []>} : vector<16x64xf32>, vector<128x64xf32>, vector<16x128xf32> -> vector<16x128xf32>
    %c0_4 = arith.constant 0 : index
    %c0_5 = arith.constant 0 : index
    %5 = vector.load %arg3[%c0_4, %c0_5] : memref<1x128xf32, #tpu.memory_space<vmem>>, vector<1x128xf32>
    %cst_6 = arith.constant 5.000000e-01 : f32
    %6 = vector.broadcast %cst_6 : f32 to vector<1x128xf32>
    %7 = arith.mulf %5, %6 : vector<1x128xf32>
    %8 = vector.broadcast %7 : vector<1x128xf32> to vector<16x128xf32>
    %9 = arith.addf %4, %8 : vector<16x128xf32>
    %c0_7 = arith.constant 0 : index
    %c0_8 = arith.constant 0 : index
    %10 = vector.load %arg4[%c0_7, %c0_8] : memref<16x128xf32, #tpu.memory_space<vmem>>, vector<16x128xf32>
    tpu.vector_store %arg4[%c0_7, %c0_8], %9 {strides = array<i32>} : memref<16x128xf32, #tpu.memory_space<vmem>>, vector<16x128xf32>,
    return
  }
  func.func @transform_0(%arg0: i32) -> (i32, i32) {
    %c0_i32 = arith.constant 0 : i32
    %c0_i32_0 = arith.constant 0 : i32
    return %arg0, %c0_i32 : i32, i32
  }
  func.func @transform_1(%arg0: i32) -> (i32, i32) {
    %c0_i32 = arith.constant 0 : i32
    %c0_i32_0 = arith.constant 0 : i32
    %c0_i32_1 = arith.constant 0 : i32
    return %c0_i32, %c0_i32_0 : i32, i32
  }
  func.func @transform_2(%arg0: i32) -> (i32, i32) {
    %c0_i32 = arith.constant 0 : i32
    %c0_i32_0 = arith.constant 0 : i32
    %c0_i32_1 = arith.constant 0 : i32
    return %c0_i32, %c0_i32_0 : i32, i32
  }
  func.func @transform_3(%arg0: i32) -> (i32, i32) {
    %c0_i32 = arith.constant 0 : i32
    %c0_i32_0 = arith.constant 0 : i32
    return %arg0, %c0_i32 : i32, i32
  }
}

</mosaic_0001>

<bundles_post_ra>
// kernel: tpu_custom_call.1
= control target key start
LH: loop header
LB: loop body
LE: loop exit
PB: predicated region body
PF: predicated region fallthrough
CT: control target
= control target key end

     0   :  { %vm40_vm0 = vcmask 523264   ;;  %s318_s0 = inlined_call_operand.vmem [shape: f32[16,64], index: 0, kind: input, shape index: {}]   ;;  %s319_s1 = inlined_call_operand.vmem [shape: f32[128,64], index: 1, kind: input, shape index: {}]   ;;  %s320_s2 = inlined_call_operand.vmem [shape: f32[1,128], index: 2, kind: input, shape index: {}]   ;;  %s321_s3 = inlined_call_operand.hbm [shape: f32[16,128], index: 3, kind: output, shape index: {}]  }
   0x1   :  { %v32_v0 = vld [vmem:[%s319_s1 + $0x78] sm:$0xff]  ;;  %v31_v1 = vld [vmem:[%s319_s1 + $0x70] sm:$0xff] }
   0x2   :  { %138 = vmatpush.xpose.msk.msra.mxu0 %vm40_vm0, %v32_v0  ;;  %156 = vmatpush.xpose.msk.msra.mxu1 %vm40_vm0, %v32_v0 }
   0x3   :  { %8 = vsyncpa [#allocation3], 0  ;;  %v30_v2 = vld [vmem:[%s319_s1 + $0x68] sm:$0xff]  ;;  %v29_v3 = vld [vmem:[%s319_s1 + $0x60] sm:$0xff]  ;;  %s126_s25 = sshll.u32 %s321_s3, 4  ;;  %s202_s26 = smov 128   ;;  %s127_s25 = int_to_ptr.hbm [resolvable:$true] %s126_s25 }
   0x4   :  { %v28_v4 = vld [vmem:[%s319_s1 + $0x58] sm:$0xff]  ;;  %v27_v5 = vld [vmem:[%s319_s1 + $0x50] sm:$0xff]  ;;  %v26_v6 = vld [vmem:[%s319_s1 + $0x48] sm:$0xff]  ;;  %s203_s27 = smov 8  }
   0x5   :  { %v25_v7 = vld [vmem:[%s319_s1 + $0x40] sm:$0xff]  ;;  %v24_v8 = vld [vmem:[%s319_s1 + $0x38] sm:$0xff]  ;;  %v23_v9 = vld [vmem:[%s319_s1 + $0x30] sm:$0xff] }
   0x6   :  { %139 = vmatpush.xpose.msk.msra.mxu0 %vm40_vm0, %v31_v1  ;;  %157 = vmatpush.xpose.msk.msra.mxu1 %vm40_vm0, %v31_v1  ;;  %v22_v10 = vld [vmem:[%s319_s1 + $0x28] sm:$0xff]  ;;  %v21_v11 = vld [vmem:[%s319_s1 + $0x20] sm:$0xff]  ;;  %v20_v12 = vld [vmem:[%s319_s1 + $0x18] sm:$0xff] }
   0x7   :  { %v19_v13 = vld [vmem:[%s319_s1 + $0x10] sm:$0xff]  ;;  %v18_v14 = vld [vmem:[%s319_s1 + $0x8] sm:$0xff]  ;;  %v15_v15 = vld [vmem:[%s318_s0] sm:$0xff] }
   0x8   :  { %v16_v16 = vld [vmem:[%s318_s0 + $0x8] sm:$0xff]  ;;  %v17_v17 = vld [vmem:[%s319_s1] sm:$0xff]  ;;  %v33_v18 = vmul.f32 0.0625, %v15_v15  ;;  %s201_s0 = smov [#allocation2]  }
   0x9   :  { %v34_v19 = vmul.f32 0.0625, %v16_v16  ;;  %v35_v20 = vld [vmem:[%s320_s2] sm:$0x1]  ;;  %s124_s23 = sshll.u32 %s201_s0, 4  ;;  %s125_s23 = int_to_ptr.vmem [resolvable:$true] %s124_s23 }
   0xa   :  { %140 = vmatpush.xpose.msk.msra.mxu0 %vm40_vm0, %v30_v2  ;;  %158 = vmatpush.xpose.msk.msra.mxu1 %vm40_vm0, %v30_v2  ;;  %v36_v21 = vmul.f32 0.5, %v35_v20 }
   0xc   :  { %v38_v22 = vperm.slane %v36_v21, 0 }
   0xe   :  { %141 = vmatpush.xpose.msk.msra.mxu0 %vm40_vm0, %v29_v3  ;;  %159 = vmatpush.xpose.msk.msra.mxu1 %vm40_vm0, %v29_v3 }
  0x12   :  { %142 = vmatpush.xpose.msk.msra.mxu0 %vm40_vm0, %v28_v4  ;;  %160 = vmatpush.xpose.msk.msra.mxu1 %vm40_vm0, %v28_v4 }
  0x16   :  { %143 = vmatpush.xpose.msk.msra.mxu0 %vm40_vm0, %v27_v5  ;;  %161 = vmatpush.xpose.msk.msra.mxu1 %vm40_vm0, %v27_v5 }
  0x1a   :  { %144 = vmatpush.xpose.msk.msra.mxu0 %vm40_vm0, %v26_v6  ;;  %162 = vmatpush.xpose.msk.msra.mxu1 %vm40_vm0, %v26_v6 }
  0x1e   :  { %145 = vmatpush.xpose.msk.msra.mxu0 %vm40_vm0, %v25_v7  ;;  %163 = vmatpush.xpose.msk.msra.mxu1 %vm40_vm0, %v25_v7 }
  0x22   :  { %146 = vmatpush.xpose.msk.msra.mxu0 %vm40_vm0, %v24_v8  ;;  %164 = vmatpush.xpose.msk.msra.mxu1 %vm40_vm0, %v24_v8 }
  0x26   :  { %147 = vmatpush.xpose.msk.msra.mxu0 %vm40_vm0, %v23_v9  ;;  %165 = vmatpush.xpose.msk.msra.mxu1 %vm40_vm0, %v23_v9 }
  0x2a   :  { %148 = vmatpush.xpose.msk.msra.mxu0 %vm40_vm0, %v22_v10  ;;  %166 = vmatpush.xpose.msk.msra.mxu1 %vm40_vm0, %v22_v10 }
  0x2e   :  { %149 = vmatpush.xpose.msk.msra.mxu0 %vm40_vm0, %v21_v11  ;;  %167 = vmatpush.xpose.msk.msra.mxu1 %vm40_vm0, %v21_v11 }
  0x32   :  { %150 = vmatpush.xpose.msk.msra.mxu0 %vm40_vm0, %v20_v12  ;;  %168 = vmatpush.xpose.msk.msra.mxu1 %vm40_vm0, %v20_v12 }
  0x36   :  { %151 = vmatpush.xpose.msk.msra.mxu0 %vm40_vm0, %v19_v13  ;;  %169 = vmatpush.xpose.msk.msra.mxu1 %vm40_vm0, %v19_v13 }
  0x3a   :  { %152 = vmatpush.xpose.msk.msra.mxu0 %vm40_vm0, %v18_v14  ;;  %170 = vmatpush.xpose.msk.msra.mxu1 %vm40_vm0, %v18_v14 }
  0x3e   :  { %153 = vmatpush.xpose.msk.msra.mxu0 %vm40_vm0, %v17_v17  ;;  %171 = vmatpush.xpose.msk.msra.mxu1 %vm40_vm0, %v17_v17 }
  0x41   :  { %154 = vmatmul.msk.f32.vlgmr.msra.gmra.mxu0 %vm40_vm0, %v33_v18  ;;  %155 = vmatmul.msk.f32.vlgmr.msra.gmra.mxu1 %vm40_vm0, %v34_v19 }
  0xbe   :  { %v112_v23 = vpop.f32.mrf.mxu0  ;;  %v115_v24 = vpop.f32.mrf.mxu1 }
  0xbf   :  { %v113_v25 = vadd.f32 %v112_v23, %v38_v22  ;;  %v116_v26 = vadd.f32 %v115_v24, %v38_v22 }
  0xc1   :  { %118 = vst [vmem:[#allocation2] sm:$0xff] %v113_v25 }
  0xc2   :  { %119 = vst [vmem:[#allocation2 + $0x8] sm:$0xff] %v116_v26 }
  0xc3   :  { %132 = dma.vmem_to_hbm [thread:$0]  %s125_s23, 256, %s127_s25, [#allocation3], %s202_s26, %s202_s26, %s203_s27  }
  0xc4   :  { %199 = dma.done.wait [#allocation3], 256  }
  0xc5   :  { %200 = vsyncadd [#allocation3], 4294967040 }
  0xc6   :  { %137 = vsyncpa [#allocation3], 1 }

</bundles_post_ra>
